<compile_context>
chip_gen: v7x
topology: tpu7x:2x2x1
jax: 0.10.0
libtpu: 0.0.40
codegen_flags: <defaults>
</compile_context>

<pallas_src>
import functools

import jax
import jax.numpy as jnp
import numpy as np
from jax.experimental import pallas as pl
from jax.experimental.pallas import tpu as pltpu


# ----------------------------------------------------------------------------
# Kernels
# ----------------------------------------------------------------------------

def _group_norm_kernel(x_ref, w_ref, b_ref, o_ref, *, gs, eps):
    """Single-pass kernel: whole group (one row) resident in VMEM.

    x_ref: (TR, GS); w_ref/b_ref: (TR, 1); o_ref: (TR, GS).
    The lane axis is the full GS extent (no padding), so the reductions are
    exact. Ragged edge *rows* may contain garbage, but their outputs are
    discarded by Pallas on write-back, and rows are independent.
    """
    x = x_ref[...].astype(jnp.float32)

    mean = jnp.sum(x, axis=-1, keepdims=True) * (1.0 / gs)            # (TR, 1)
    xc = x - mean
    # Unbiased variance (torch.var default). Guard gs == 1.
    var = jnp.sum(xc * xc, axis=-1, keepdims=True) * (1.0 / max(gs - 1, 1))
    inv_std = jax.lax.rsqrt(var + eps)                                # EUP

    # Fold the per-group affine into one per-row scale/shift so the only
    # full-tile math is a single multiply-add.
    scale = inv_std * w_ref[...].astype(jnp.float32)                  # (TR, 1)
    shift = b_ref[...].astype(jnp.float32) - mean * scale             # (TR, 1)

    o_ref[...] = (x * scale + shift).astype(o_ref.dtype)


def _stats_kernel(x_ref, s1_ref, s2_ref, *, gs, tc):
    """Two-pass path, pass 1: accumulate sum(x) and sum(x^2) per row across
    column tiles. Grid = (row_blocks, col_blocks); col axis is "arbitrary"."""
    c = pl.program_id(1)

    @pl.when(c == 0)
    def _():
        s1_ref[...] = jnp.zeros_like(s1_ref)
        s2_ref[...] = jnp.zeros_like(s2_ref)

    x = x_ref[...].astype(jnp.float32)
    # Mask the padded tail of the ragged last column block so it does not
    # contaminate the sums (edge-block padding values are undefined).
    cols = c * tc + jax.lax.broadcasted_iota(jnp.int32, x.shape, 1)
    x = jnp.where(cols < gs, x, 0.0)

    s1_ref[...] += jnp.sum(x, axis=-1, keepdims=True)
    s2_ref[...] += jnp.sum(x * x, axis=-1, keepdims=True)


def _apply_kernel(x_ref, scale_ref, shift_ref, o_ref):
    """Two-pass path, pass 2: out = x * scale_row + shift_row."""
    x = x_ref[...].astype(jnp.float32)
    o_ref[...] = (x * scale_ref[...] + shift_ref[...]).astype(o_ref.dtype)


# ----------------------------------------------------------------------------
# Host-side wrappers
# ----------------------------------------------------------------------------

def _vmem_capacity_bytes():
    """Per-core VMEM capacity; conservative (v7x-sized) fallback on failure."""
    try:
        info = pltpu.get_tpu_info()
        cap = getattr(info, "vmem_capacity_bytes", None)
        if cap:
            return int(cap)
    except Exception:
        pass
    return 64 * 1024 * 1024


def _single_pass(x_rows, w_rows, b_rows, *, GS, R, eps, itemsize,
                 target_block_bytes, vmem_budget):
    # Rows per block, sized from the I/O tile target.
    max_rows = max(1, target_block_bytes // (GS * itemsize))
    if R <= max_rows:
        TR = R                                        # full dim -> layout-legal
    else:
        TR = min(R, max(8, (max_rows // 8) * 8))      # sublane-aligned tile
    # Ensure >= 2 grid steps when there is enough work so the "parallel" axis
    # can shard across multi-TensorCore chips (extra step cost is ~0.35 us).
    if R >= 16 and TR >= R:
        TR = max(8, (pl.cdiv(R, 2) // 8) * 8)

    grid = (pl.cdiv(R, TR),)

    # VMEM need: double-buffered in + out (storage dtype) + f32 temporaries.
    need = 4 * TR * GS * itemsize + 2 * TR * GS * 4 + (2 << 20)
    vmem_limit = int(min(vmem_budget, max(need, 32 * 1024 * 1024)))

    kernel = functools.partial(_group_norm_kernel, gs=GS, eps=eps)
    return pl.pallas_call(
        kernel,
        out_shape=jax.ShapeDtypeStruct((R, GS), x_rows.dtype),
        grid_spec=pltpu.PrefetchScalarGridSpec(
            num_scalar_prefetch=0,
            grid=grid,
            in_specs=[
                pl.BlockSpec((TR, GS), lambda r: (r, 0)),   # x rows (full lanes)
                pl.BlockSpec((TR, 1), lambda r: (r, 0)),    # per-row weight
                pl.BlockSpec((TR, 1), lambda r: (r, 0)),    # per-row bias
            ],
            out_specs=pl.BlockSpec((TR, GS), lambda r: (r, 0)),
        ),
        compiler_params=pltpu.CompilerParams(
            dimension_semantics=("parallel",),
            vmem_limit_bytes=vmem_limit),
    )(x_rows, w_rows, b_rows)


def _two_pass(x_rows, w_rows, b_rows, *, GS, R, eps, itemsize,
              target_block_bytes, vmem_budget):
    """Column-tiled fallback for groups too large to hold in VMEM at once.

    Costs one extra HBM read of x (unavoidable once a group exceeds VMEM) but
    keeps block sizes bounded on every generation.
    """
    assert GS >= 128, "two-pass path expects at least one full lane vreg"
    TR = min(R, 8)
    col_budget = max(128, target_block_bytes // max(1, TR * itemsize))
    TC = max(128, (min(col_budget, GS) // 128) * 128)   # lane-dense column tile
    grid = (pl.cdiv(R, TR), pl.cdiv(GS, TC))

    need = 4 * TR * TC * itemsize + 2 * TR * TC * 4 + (2 << 20)
    vmem_limit = int(min(vmem_budget, max(need, 32 * 1024 * 1024)))

    stats = functools.partial(_stats_kernel, gs=GS, tc=TC)
    s1, s2 = pl.pallas_call(
        stats,
        out_shape=(jax.ShapeDtypeStruct((R, 1), jnp.float32),
                   jax.ShapeDtypeStruct((R, 1), jnp.float32)),
        grid_spec=pltpu.PrefetchScalarGridSpec(
            num_scalar_prefetch=0,
            grid=grid,
            in_specs=[pl.BlockSpec((TR, TC), lambda r, c: (r, c))],
            out_specs=(pl.BlockSpec((TR, 1), lambda r, c: (r, 0)),
                       pl.BlockSpec((TR, 1), lambda r, c: (r, 0))),
        ),
        compiler_params=pltpu.CompilerParams(
            dimension_semantics=("parallel", "arbitrary"),
            vmem_limit_bytes=vmem_limit),
    )(x_rows)

    # Tiny O(R) epilogue: fold stats + per-group affine into per-row scale/shift.
    mean = s1 * (1.0 / GS)
    var = (s2 - s1 * mean) * (1.0 / max(GS - 1, 1))   # unbiased (torch.var default)
    inv_std = jax.lax.rsqrt(var + eps)
    scale = inv_std * w_rows
    shift = b_rows - mean * scale

    return pl.pallas_call(
        _apply_kernel,
        out_shape=jax.ShapeDtypeStruct((R, GS), x_rows.dtype),
        grid_spec=pltpu.PrefetchScalarGridSpec(
            num_scalar_prefetch=0,
            grid=grid,
            in_specs=[pl.BlockSpec((TR, TC), lambda r, c: (r, c)),
                      pl.BlockSpec((TR, 1), lambda r, c: (r, 0)),
                      pl.BlockSpec((TR, 1), lambda r, c: (r, 0))],
            out_specs=pl.BlockSpec((TR, TC), lambda r, c: (r, c)),
        ),
        compiler_params=pltpu.CompilerParams(
            dimension_semantics=("parallel", "parallel"),
            vmem_limit_bytes=vmem_limit),
    )(x_rows, scale, shift)


def group_norm(x, weight, bias, num_groups, *, eps=1e-5,
               target_block_bytes=None, force_two_pass=False):
    """x: (N, C, H, W); weight/bias: (1, G, 1, 1) or None. Returns (N, C, H, W)."""
    N, C, H, W = x.shape
    G = num_groups
    assert C % G == 0, "num_channels must be divisible by num_groups"
    GS = (C // G) * H * W          # elements reduced per group
    R = N * G                      # number of independent groups (rows)
    itemsize = jnp.dtype(x.dtype).itemsize

    # Per-generation budgets (v5e/v6e: 128 MiB VMEM; v7x: 64 MiB per core).
    vmem_cap = _vmem_capacity_bytes()
    if vmem_cap >= 128 * 1024 * 1024:
        vmem_budget = 100 * 1024 * 1024
        default_block = 8 * 1024 * 1024
    else:
        vmem_budget = 48 * 1024 * 1024
        default_block = 4 * 1024 * 1024
    if target_block_bytes is None:
        target_block_bytes = default_block

    # Per-group affine params -> one (scale, bias) scalar per row (r = n*G + g).
    w_g = (jnp.ones((G,), jnp.float32) if weight is None
           else weight.reshape(G).astype(jnp.float32))
    b_g = (jnp.zeros((G,), jnp.float32) if bias is None
           else bias.reshape(G).astype(jnp.float32))
    w_rows = jnp.tile(w_g, N).reshape(R, 1)
    b_rows = jnp.tile(b_g, N).reshape(R, 1)

    # No padding and no output slice: the kernel is the only HBM pass over x.
    x_rows = x.reshape(R, GS)

    # Huge-group fallback decision: can an 8-row whole-group block (plus
    # double-buffering and f32 temporaries) fit the per-generation budget?
    tr_min = min(R, 8)
    need_min = 4 * tr_min * GS * itemsize + 2 * tr_min * GS * 4 + (2 << 20)
    use_two_pass = force_two_pass or (GS >= 256 and need_min > vmem_budget)

    if use_two_pass:
        out_rows = _two_pass(x_rows, w_rows, b_rows, GS=GS, R=R, eps=eps,
                             itemsize=itemsize,
                             target_block_bytes=target_block_bytes,
                             vmem_budget=vmem_budget)
    else:
        out_rows = _single_pass(x_rows, w_rows, b_rows, GS=GS, R=R, eps=eps,
                                itemsize=itemsize,
                                target_block_bytes=target_block_bytes,
                                vmem_budget=vmem_budget)

    return out_rows.reshape(N, C, H, W)


# ----------------------------------------------------------------------------
# Reference & test
# ----------------------------------------------------------------------------

def _reference(x, weight, bias, num_groups, eps=1e-5):
    N, C, H, W = x.shape
    G = num_groups
    xg = x.reshape(N, G, -1).astype(jnp.float32)
    mean = xg.mean(-1, keepdims=True)
    var = xg.var(-1, keepdims=True, ddof=1)          # unbiased, like torch.var
    normalized = (xg - mean) / jnp.sqrt(var + eps)
    out = normalized * weight.reshape(1, G, 1) + bias.reshape(1, G, 1)
    return out.reshape(N, C, H, W).astype(x.dtype)


if __name__ == "__main__":
    key = jax.random.PRNGKey(0)

    def run_case(N, C, H, W, G, *, force_two_pass=False, seed_offset=0):
        kx, kw, kb = jax.random.split(jax.random.fold_in(key, seed_offset), 3)
        x = jax.random.normal(kx, (N, C, H, W), dtype=jnp.float32)
        # reset_parameters() gives ones/zeros; perturb slightly to exercise affine.
        weight = (jnp.ones((1, G, 1, 1), jnp.float32)
                  + 0.1 * jax.random.normal(kw, (1, G, 1, 1)))
        bias = 0.1 * jax.random.normal(kb, (1, G, 1, 1), dtype=jnp.float32)

        out = group_norm(x, weight, bias, G, eps=1e-5,
                         force_two_pass=force_two_pass)
        out = jax.block_until_ready(out)
        ref = _reference(x, weight, bias, G, eps=1e-5)
        np.testing.assert_allclose(np.asarray(out), np.asarray(ref),
                                   rtol=1e-5, atol=1e-5)

    # Module config from the spec: num_groups=2, num_channels=4.
    run_case(2, 4, 16, 16, 2)                                   # single-pass, GS=512
    run_case(2, 4, 10, 10, 2, seed_offset=1)                    # single-pass, GS=200 (lanes not %128)
    run_case(2, 4, 10, 10, 2, force_two_pass=True, seed_offset=2)  # two-pass fallback, ragged col tile
    run_case(9, 4, 8, 8, 2, seed_offset=3)                      # single-pass, R=18 -> multi-step grid, ragged rows

    print("KERNEL_OK")
</pallas_src>

<mosaic_0001>
module attributes {stable_mosaic.version = 11 : i64} {
  func.func @_group_norm_kernel(%arg0: i32, %arg1: memref<4x512xf32, #tpu.memory_space<vmem>>, %arg2: memref<4x1xf32, #tpu.memory_space<vmem>>, %arg3: memref<4x1xf32, #tpu.memory_space<vmem>>, %arg4: memref<4x512xf32, #tpu.memory_space<vmem>>) attributes {dimension_semantics = [#tpu.dimension_semantics<parallel>], iteration_bounds = array<i64: 1>, scalar_prefetch = 0 : i64, scratch_operands = 0 : i64, tpu.core_type = #tpu.core_type<tc>, window_params = [{transform_indices = @transform_0, window_bounds = array<i64: 4, 512>}, {transform_indices = @transform_1, window_bounds = array<i64: 4, 1>}, {transform_indices = @transform_2, window_bounds = array<i64: 4, 1>}, {transform_indices = @transform_3, window_bounds = array<i64: 4, 512>}]} {
    %c0 = arith.constant 0 : index
    %c0_0 = arith.constant 0 : index
    %0 = vector.load %arg1[%c0, %c0_0] : memref<4x512xf32, #tpu.memory_space<vmem>>, vector<4x512xf32>
    %cst = arith.constant dense<0.000000e+00> : vector<4xf32>
    %1 = vector.multi_reduction <add>, %0, %cst [1] : vector<4x512xf32> to vector<4xf32>
    %2 = vector.shape_cast %1 : vector<4xf32> to vector<4x1xf32>
    %cst_1 = arith.constant 0.001953125 : f32
    %3 = vector.broadcast %cst_1 : f32 to vector<4x1xf32>
    %4 = arith.mulf %2, %3 : vector<4x1xf32>
    %5 = vector.broadcast %4 : vector<4x1xf32> to vector<4x512xf32>
    %6 = arith.subf %0, %5 : vector<4x512xf32>
    %7 = arith.mulf %6, %6 : vector<4x512xf32>
    %cst_2 = arith.constant dense<0.000000e+00> : vector<4xf32>
    %8 = vector.multi_reduction <add>, %7, %cst_2 [1] : vector<4x512xf32> to vector<4xf32>
    %9 = vector.shape_cast %8 : vector<4xf32> to vector<4x1xf32>
    %cst_3 = arith.constant 0.00195694715 : f32
    %10 = vector.broadcast %cst_3 : f32 to vector<4x1xf32>
    %11 = arith.mulf %9, %10 : vector<4x1xf32>
    %cst_4 = arith.constant 9.99999974E-6 : f32
    %12 = vector.broadcast %cst_4 : f32 to vector<4x1xf32>
    %13 = arith.addf %11, %12 : vector<4x1xf32>
    %14 = math.rsqrt %13 : vector<4x1xf32>
    %c0_5 = arith.constant 0 : index
    %c0_6 = arith.constant 0 : index
    %15 = vector.load %arg2[%c0_5, %c0_6] : memref<4x1xf32, #tpu.memory_space<vmem>>, vector<4x1xf32>
    %16 = arith.mulf %14, %15 : vector<4x1xf32>
    %c0_7 = arith.constant 0 : index
    %c0_8 = arith.constant 0 : index
    %17 = vector.load %arg3[%c0_7, %c0_8] : memref<4x1xf32, #tpu.memory_space<vmem>>, vector<4x1xf32>
    %18 = arith.mulf %4, %16 : vector<4x1xf32>
    %19 = arith.subf %17, %18 : vector<4x1xf32>
    %20 = vector.broadcast %16 : vector<4x1xf32> to vector<4x512xf32>
    %21 = arith.mulf %0, %20 : vector<4x512xf32>
    %22 = vector.broadcast %19 : vector<4x1xf32> to vector<4x512xf32>
    %23 = arith.addf %21, %22 : vector<4x512xf32>
    %c0_9 = arith.constant 0 : index
    %c0_10 = arith.constant 0 : index
    %24 = vector.load %arg4[%c0_9, %c0_10] : memref<4x512xf32, #tpu.memory_space<vmem>>, vector<4x512xf32>
    tpu.vector_store %arg4[%c0_9, %c0_10], %23 {strides = array<i32>} : memref<4x512xf32, #tpu.memory_space<vmem>>, vector<4x512xf32>,
    return
  }
  func.func @transform_0(%arg0: i32) -> (i32, i32) {
    %c0_i32 = arith.constant 0 : i32
    %c0_i32_0 = arith.constant 0 : i32
    return %arg0, %c0_i32 : i32, i32
  }
  func.func @transform_1(%arg0: i32) -> (i32, i32) {
    %c0_i32 = arith.constant 0 : i32
    %c0_i32_0 = arith.constant 0 : i32
    return %arg0, %c0_i32 : i32, i32
  }
  func.func @transform_2(%arg0: i32) -> (i32, i32) {
    %c0_i32 = arith.constant 0 : i32
    %c0_i32_0 = arith.constant 0 : i32
    return %arg0, %c0_i32 : i32, i32
  }
  func.func @transform_3(%arg0: i32) -> (i32, i32) {
    %c0_i32 = arith.constant 0 : i32
    %c0_i32_0 = arith.constant 0 : i32
    return %arg0, %c0_i32 : i32, i32
  }
}

</mosaic_0001>

<bundles_post_ra>
// kernel: tpu_custom_call.1
= control target key start
LH: loop header
LB: loop body
LE: loop exit
PB: predicated region body
PF: predicated region fallthrough
CT: control target
= control target key end

     0   :  { %8 = vsyncpa [#allocation3], 0  ;;  %s247_s0 = inlined_call_operand.hbm [shape: f32[4,512], index: 0, kind: input, shape index: {}]   ;;  %s248_s1 = inlined_call_operand.vmem [shape: f32[4,1], index: 1, kind: input, shape index: {}]   ;;  %s249_s2 = inlined_call_operand.vmem [shape: f32[4,1], index: 2, kind: input, shape index: {}]   ;;  %s250_s3 = inlined_call_operand.hbm [shape: f32[4,512], index: 3, kind: output, shape index: {}]  }
   0x1   :  { %9 = vsyncpa [#allocation4], 0  ;;  %s185_s12 = smov [#allocation2]   ;;  %s137_s16 = scalar_lea.hbm %s247_s0, 256 }
   0x2   :  { %s16_s13 = sshll.u32 %s185_s12, 4  ;;  %p138_p0 = scmp.ne.s32.totalorder %s247_s0, %s137_s16  ;;  %s17_s13 = int_to_ptr.vmem [resolvable:$true] %s16_s13 }
   0x3   :  { %p141_p1 = scmp.lt.u32.totalorder %s137_s16, %s247_s0 }
   0x5   :  { %p143_p2 = pnand %p141_p1, %p138_p0 }
   0x7   :  { %146 = shalt.err (!%p143_p2)
}
   0x8   :  { %s147_s21 = scalar_lea.vmem %s17_s13, 256  ;;  %p152_p4 = scmp.lt.s32.totalorder %s17_s13, %s17_s13 }
   0x9   :  { %p148_p3 = scmp.ne.s32.totalorder %s17_s13, %s147_s21  ;;  %p153_p5 = scmp.lt.s32.totalorder %s147_s21, %s147_s21 }
   0xb   :  { %p154_p6 = por %p153_p5, %p152_p4 }
   0xd   :  { %p155_p7 = pnand %p154_p6, %p148_p3 }
   0xf   :  { %158 = shalt.err (!%p155_p7)
}
  0x10   :  { %19 = dma.hbm_to_vmem [thread:$0]  %s247_s0, 256, %s17_s13, [#allocation3]  }
  0x11   :  { %181 = dma.done.wait [#allocation3], 256  }
  0x12   :  { %182 = vsyncadd [#allocation3], 4294967040  ;;  %vm35_vm0 = vcmask 1043456   ;;  %v27_v0 = vld [vmem:[#allocation2] sm:$0xff]  ;;  %v28_v1 = vld [vmem:[#allocation2 + $0x8] sm:$0xff]  ;;  %v50_v13 = vlaneseq  ;;  %v187_v33 = vmov 0  }
  0x13   :  { %v31_v2 = vcombine.high %v27_v0, %v27_v0  ;;  %v32_v3 = vcombine.high %v28_v1, %v28_v1  ;;  %v36_v4 = vsel %vm35_vm0, %v27_v0, 0.0  ;;  %v39_v6 = vsel %vm35_vm0, %v28_v1, 0.0  ;;  %131 = vset.pattern.permute.xlu1 %v187_v33  ;;  %132 = vset.pattern.permute.xlu0 %v187_v33  ;;  %v77_v37 = vld [vmem:[%s248_s1] sm:$0xf]  ;;  %s188_s27 = smov [#allocation5]  }
  0x14   :  { %v186_v11 = vmov 839922192   ;;  %v51_v15 = vshrl.u32 %v50_v13, 7  ;;  %v79_v40 = vld [vmem:[%s249_s2] sm:$0xf]  ;;  %s118_s28 = sshll.u32 %s188_s27, 4  ;;  %s119_s28 = int_to_ptr.vmem [resolvable:$true] %s118_s28 }
  0x15   :  { %v37_v5 = vsel %vm35_vm0, %v31_v2, 0.0  ;;  %v41_v8 = vsel %vm35_vm0, %v32_v3, 0.0  ;;  %v48_v12 = vunpack.c.l.s4 %v186_v11  ;;  %s159_s1 = scalar_lea.vmem %s119_s28, 256  ;;  %p164_p9 = scmp.lt.s32.totalorder %s119_s28, %s119_s28 }
  0x16   :  { %v38_v7 = vadd.f32 %v37_v5, %v36_v4  ;;  %p160_p8 = scmp.ne.s32.totalorder %s119_s28, %s159_s1  ;;  %p165_p10 = scmp.lt.s32.totalorder %s159_s1, %s159_s1 }
  0x17   :  { %v49_v14 = vunpack.c.0.s8 %v48_v12 }
  0x18   :  { %v40_v9 = vadd.f32 %v39_v6, %v38_v7  ;;  %p166_p11 = por %p165_p10, %p164_p9 }
  0x19   :  { %v52_v16 = vsub.s32 %v49_v14, %v51_v15 }
  0x1a   :  { %v42_v10 = vadd.f32 %v41_v8, %v40_v9  ;;  %p167_p12 = pnand %p166_p11, %p160_p8 }
  0x1c   :  { %43 = vadd.xlane.f32.xlu0 %v42_v10 }
  0xa9   :  { %v44_v17 = vpop.xlane.xlu0 %43 }
  0xaa   :  { %v45_v18 = vmul.f32 0.001953125, %v44_v17 }
  0xac   :  { %v53_v19 = vrot.slane %v45_v18, %v52_v16 }
  0xae   :  { %v55_v20 = vsub.f32 %v27_v0, %v53_v19  ;;  %v56_v21 = vsub.f32 %v28_v1, %v53_v19 }
  0xb0   :  { %v57_v22 = vmul.f32 %v55_v20, %v55_v20  ;;  %v58_v23 = vmul.f32 %v56_v21, %v56_v21 }
  0xb2   :  { %v61_v24 = vcombine.high %v57_v22, %v57_v22  ;;  %v62_v25 = vcombine.high %v58_v23, %v58_v23  ;;  %v65_v26 = vsel %vm35_vm0, %v57_v22, 0.0  ;;  %v68_v29 = vsel %vm35_vm0, %v58_v23, 0.0 }
  0xb4   :  { %v66_v27 = vsel %vm35_vm0, %v61_v24, 0.0  ;;  %v70_v31 = vsel %vm35_vm0, %v62_v25, 0.0 }
  0xb5   :  { %v67_v28 = vadd.f32 %v66_v27, %v65_v26 }
  0xb7   :  { %v69_v30 = vadd.f32 %v68_v29, %v67_v28 }
  0xb9   :  { %v71_v32 = vadd.f32 %v70_v31, %v69_v30 }
  0xbb   :  { %72 = vadd.xlane.f32.xlu0 %v71_v32 }
 0x148   :  { %v73_v34 = vpop.xlane.xlu0 %72 }
 0x149   :  { %v74_v35 = vmul.f32 0.0019569471, %v73_v34 }
 0x14b   :  { %v75_v36 = vadd.f32 1e-05, %v74_v35 }
 0x14d   :  { %135 = vrsqrt.f32 %v75_v36 }
 0x157   :  { %v136_v38 = vpop.eup %135 }
 0x158   :  { %v78_v39 = vmul.f32 %v136_v38, %v77_v37 }
 0x15a   :  { %84 = vperm.xlu1 %131, %v78_v39   ;;  %v80_v41 = vmul.f32 %v78_v39, %v45_v18 }
 0x15c   :  { %v81_v42 = vsub.f32 %v79_v40, %v80_v41 }
 0x15e   :  { %98 = vperm.xlu1 %131, %v81_v42  }
 0x1d9   :  { %v85_v43 = vpop.permute.xlu1 %84 }
 0x1da   :  { %v92_v44 = vrot.slane %v85_v43, %v52_v16 }
 0x1dc   :  { %v94_v46 = vmul.f32 %v92_v44, %v27_v0  ;;  %v95_v47 = vmul.f32 %v92_v44, %v28_v1 }
 0x1dd   :  { %v99_v45 = vpop.permute.xlu1 %98 }
 0x1de   :  { %v106_v48 = vrot.slane %v99_v45, %v52_v16 }
 0x1e0   :  { %v108_v49 = vadd.f32 %v106_v48, %v94_v46  ;;  %v109_v50 = vadd.f32 %v106_v48, %v95_v47 }
 0x1e2   :  { %110 = vst [vmem:[#allocation5] sm:$0xff] %v108_v49  ;;  %111 = vst [vmem:[#allocation5 + $0x8] sm:$0xff] %v109_v50 }
 0x1e3   :  { %170 = shalt.err (!%p167_p12)
}
 0x1e4   :  { %s171_s30 = scalar_lea.hbm %s250_s3, 256 }
 0x1e5   :  { %p172_p13 = scmp.ne.s32.totalorder %s250_s3, %s171_s30  ;;  %p175_p0 = scmp.lt.u32.totalorder %s171_s30, %s250_s3 }
 0x1e7   :  { %p177_p1 = pnand %p175_p0, %p172_p13 }
 0x1e9   :  { %180 = shalt.err (!%p177_p1)
}
 0x1ea   :  { %121 = dma.vmem_to_hbm [thread:$0]  %s119_s28, 256, %s250_s3, [#allocation4]  }
 0x1eb   :  { %183 = dma.done.wait [#allocation4], 256  }
 0x1ec   :  { %184 = vsyncadd [#allocation4], 4294967040 }
 0x1ed   :  { %125 = vsyncpa [#allocation3], 1 }
 0x1ee   :  { %126 = vsyncpa [#allocation4], 1 }

</bundles_post_ra>
